<compile_context>
chip_gen: v6e
topology: v6e:2x2x1
jax: 0.10.0
libtpu: 0.0.40
codegen_flags: <defaults>
</compile_context>

<pallas_src>
import functools

import jax
import jax.numpy as jnp
from jax.experimental import pallas as pl
from jax.experimental.pallas import tpu as pltpu


# Explicit scoped-VMEM budget: well above the 16 MiB (v5e) / 32 MiB (v6e/v7x) defaults,
# and below v7x's 64 MiB/TC physical capacity.
_VMEM_LIMIT_BYTES = 48 * 1024 * 1024


# ----------------------------------------------------------------------------
# Init-time kernel: fuse the Linear projection into the embedding table.
# Call ONCE at model init / weight load, never in the per-step forward path.
# ----------------------------------------------------------------------------
def _project_table_kernel(table_ref, w_ref, b_ref, proj_ref):
    proj_ref[...] = (
        jnp.dot(table_ref[...], w_ref[...], preferred_element_type=jnp.float32)
        + b_ref[...]
    ).astype(proj_ref.dtype)


def init_user_embedding_params(table, w_t, b, gamma, beta, *, tile_u=512):
    """One-time fold: proj_table = table @ w_t + b, plus packed LayerNorm affine (2, H)."""
    num_users, emb_dim = table.shape
    hidden = w_t.shape[1]
    # Tile the user axis (multiple of 8, or the full axis when it is small).
    tile_u = min(num_users, tile_u)

    proj_table = pl.pallas_call(
        _project_table_kernel,
        out_shape=jax.ShapeDtypeStruct((num_users, hidden), jnp.float32),
        grid_spec=pltpu.PrefetchScalarGridSpec(
            num_scalar_prefetch=0,
            grid=(pl.cdiv(num_users, tile_u),),
            in_specs=[
                pl.BlockSpec((tile_u, emb_dim), lambda i: (i, 0)),   # table tile
                pl.BlockSpec((emb_dim, hidden), lambda i: (0, 0)),   # W^T (constant block)
                pl.BlockSpec((1, hidden), lambda i: (0, 0)),         # bias (constant block)
            ],
            out_specs=pl.BlockSpec((tile_u, hidden), lambda i: (i, 0)),
        ),
        compiler_params=pltpu.CompilerParams(
            dimension_semantics=("parallel",),
            vmem_limit_bytes=_VMEM_LIMIT_BYTES,
        ),
    )(table, w_t, b)

    gamma_beta = jnp.concatenate([gamma, beta], axis=0)   # (2, H), packed once at init
    return proj_table, gamma_beta


# ----------------------------------------------------------------------------
# Forward kernel: per-batch-tile one-hot gather (MXU) + LayerNorm (VPU/XLU/EUP).
# ----------------------------------------------------------------------------
def _gather_layernorm_kernel(num_users, eps, ids_ref, proj_ref, gb_ref, out_ref):
    ids = ids_ref[...]                                                 # (TB, 1) int32
    tb = ids.shape[0]

    # One-hot selector -> single MXU matmul (exact row pick; fine for small tables).
    sel = (jax.lax.broadcasted_iota(jnp.int32, (tb, num_users), 1)
           == ids).astype(jnp.float32)                                 # (TB, U)
    x = jnp.dot(sel, proj_ref[...], preferred_element_type=jnp.float32)  # (TB, H)

    # LayerNorm over the lane-dense hidden axis; independent lane reductions, f32 stats.
    mean = jnp.mean(x, axis=-1, keepdims=True)
    mean_sq = jnp.mean(x * x, axis=-1, keepdims=True)
    var = mean_sq - mean * mean
    norm = (x - mean) * jax.lax.rsqrt(var + eps)                       # rsqrt -> EUP slot
    out = norm * gb_ref[0:1, :] + gb_ref[1:2, :]                       # packed gamma / beta

    # Dropout: identity in eval mode.
    out_ref[...] = out.astype(out_ref.dtype)


def user_embedding_forward(user_ids, proj_table, gamma_beta, *, eps=1e-5, block_b=256):
    """user_ids: (B,) int -> (B, H) float32.

    proj_table / gamma_beta come from init_user_embedding_params (computed once).
    block_b: batch tile; use 128 on v5e, 256 on v6e/v7x (and pick it so the grid has
    >= 2 tiles on v7x to keep both TensorCores busy).
    """
    num_users, hidden = proj_table.shape
    batch = user_ids.shape[0]

    assert block_b % 8 == 0, "batch tile must be sublane-aligned (multiple of 8)"
    # Don't use a tile larger than the (sublane-rounded) batch.
    block_b = min(block_b, pl.cdiv(batch, 8) * 8)

    ids2d = user_ids.astype(jnp.int32).reshape(batch, 1)

    kernel = functools.partial(_gather_layernorm_kernel, num_users, eps)
    grid = (pl.cdiv(batch, block_b),)   # ragged last block handled by Pallas

    return pl.pallas_call(
        kernel,
        out_shape=jax.ShapeDtypeStruct((batch, hidden), jnp.float32),
        grid_spec=pltpu.PrefetchScalarGridSpec(
            num_scalar_prefetch=0,
            grid=grid,
            in_specs=[
                pl.BlockSpec((block_b, 1), lambda i: (i, 0)),          # ids tile (pipelined)
                pl.BlockSpec((num_users, hidden), lambda i: (0, 0),    # projected table
                             pipeline_mode=pl.Buffered(1)),            #   resident, single buffer
                pl.BlockSpec((2, hidden), lambda i: (0, 0),            # packed gamma/beta
                             pipeline_mode=pl.Buffered(1)),
            ],
            out_specs=pl.BlockSpec((block_b, hidden), lambda i: (i, 0)),
        ),
        compiler_params=pltpu.CompilerParams(
            dimension_semantics=("parallel",),
            vmem_limit_bytes=_VMEM_LIMIT_BYTES,
        ),
    )(ids2d, proj_table, gamma_beta)


# ----------------------------------------------------------------------------
# Pure-JAX reference (mirrors the PyTorch forward, eval mode).
# ----------------------------------------------------------------------------
def reference_forward(user_ids, table, w_t, b, gamma, beta, eps=1e-5):
    x = table[user_ids]                            # (B, E)
    y = x @ w_t + b                                # (B, H)
    mean = y.mean(-1, keepdims=True)
    var = ((y - mean) ** 2).mean(-1, keepdims=True)
    return (y - mean) / jnp.sqrt(var + eps) * gamma + beta


if __name__ == "__main__":
    # config: num_users=64, user_embedding_dim=32, hidden_size=128, dropout=0.1 (eval -> no-op)
    num_users, emb_dim, hidden, batch = 64, 32, 128, 256

    key = jax.random.PRNGKey(0)
    k_tab, k_w, k_b, k_ids = jax.random.split(key, 4)

    # nn.Embedding init: N(0, 1); padding_idx=0 row zeroed.
    table = jax.random.normal(k_tab, (num_users, emb_dim), dtype=jnp.float32)
    table = table.at[0].set(0.0)

    # nn.Linear init: U(-1/sqrt(in), 1/sqrt(in)); weight stored transposed (E, H).
    bound = 1.0 / (emb_dim ** 0.5)
    w_t = jax.random.uniform(k_w, (emb_dim, hidden), jnp.float32, -bound, bound)
    b = jax.random.uniform(k_b, (1, hidden), jnp.float32, -bound, bound)

    # nn.LayerNorm init.
    gamma = jnp.ones((1, hidden), jnp.float32)
    beta = jnp.zeros((1, hidden), jnp.float32)

    user_ids = jax.random.randint(k_ids, (batch,), 0, num_users, dtype=jnp.int32)
    user_ids = user_ids.at[0].set(0)   # exercise the padding_idx row

    # One-time fold of the Linear into the table (hoisted out of the forward path).
    proj_table, gamma_beta = init_user_embedding_params(table, w_t, b, gamma, beta)
    proj_table = jax.block_until_ready(proj_table)

    # Per-step forward: block_b=128 -> 2 batch tiles (keeps both v7x TensorCores busy).
    out = user_embedding_forward(user_ids, proj_table, gamma_beta, block_b=128)
    out = jax.block_until_ready(out)

    ref = reference_forward(user_ids, table, w_t, b, gamma, beta)
    assert out.shape == (batch, hidden)
    max_err = float(jnp.max(jnp.abs(out - ref)))
    assert jnp.allclose(out, ref, atol=1e-4, rtol=1e-4), max_err

    print("KERNEL_OK")
</pallas_src>

<mosaic_0001>
module attributes {stable_mosaic.version = 11 : i64} {
  func.func @_project_table_kernel(%arg0: i32, %arg1: memref<64x32xf32, #tpu.memory_space<vmem>>, %arg2: memref<32x128xf32, #tpu.memory_space<vmem>>, %arg3: memref<1x128xf32, #tpu.memory_space<vmem>>, %arg4: memref<64x128xf32, #tpu.memory_space<vmem>>) attributes {dimension_semantics = [#tpu.dimension_semantics<parallel>], iteration_bounds = array<i64: 1>, scalar_prefetch = 0 : i64, scratch_operands = 0 : i64, tpu.core_type = #tpu.core_type<tc>, window_params = [{transform_indices = @transform_0, window_bounds = array<i64: 64, 32>}, {pipeline_mode = #tpu.pipeline_mode<synchronous>, transform_indices = @transform_1, window_bounds = array<i64: 32, 128>}, {pipeline_mode = #tpu.pipeline_mode<synchronous>, transform_indices = @transform_2, window_bounds = array<i64: 1, 128>}, {transform_indices = @transform_3, window_bounds = array<i64: 64, 128>}]} {
    %c0 = arith.constant 0 : index
    %c0_0 = arith.constant 0 : index
    %0 = vector.load %arg1[%c0, %c0_0] : memref<64x32xf32, #tpu.memory_space<vmem>>, vector<64x32xf32>
    %c0_1 = arith.constant 0 : index
    %c0_2 = arith.constant 0 : index
    %1 = vector.load %arg2[%c0_1, %c0_2] : memref<32x128xf32, #tpu.memory_space<vmem>>, vector<32x128xf32>
    %cst = arith.constant dense<0.000000e+00> : vector<64x128xf32>
    %2 = tpu.matmul %0, %1, %cst {dimension_numbers = #tpu.dot_dimension_numbers<[1], [0], [0], [1], [0, 0, 1, 1], [], []>} : vector<64x32xf32>, vector<32x128xf32>, vector<64x128xf32> -> vector<64x128xf32>
    %c0_3 = arith.constant 0 : index
    %c0_4 = arith.constant 0 : index
    %3 = vector.load %arg3[%c0_3, %c0_4] : memref<1x128xf32, #tpu.memory_space<vmem>>, vector<1x128xf32>
    %4 = vector.broadcast %3 : vector<1x128xf32> to vector<64x128xf32>
    %5 = arith.addf %2, %4 : vector<64x128xf32>
    %c0_5 = arith.constant 0 : index
    %c0_6 = arith.constant 0 : index
    %6 = vector.load %arg4[%c0_5, %c0_6] : memref<64x128xf32, #tpu.memory_space<vmem>>, vector<64x128xf32>
    tpu.vector_store %arg4[%c0_5, %c0_6], %5 {strides = array<i32>} : memref<64x128xf32, #tpu.memory_space<vmem>>, vector<64x128xf32>,
    return
  }
  func.func @transform_0(%arg0: i32) -> (i32, i32) {
    %c0_i32 = arith.constant 0 : i32
    %c0_i32_0 = arith.constant 0 : i32
    return %arg0, %c0_i32 : i32, i32
  }
  func.func @transform_1(%arg0: i32) -> (i32, i32) {
    %c0_i32 = arith.constant 0 : i32
    %c0_i32_0 = arith.constant 0 : i32
    %c0_i32_1 = arith.constant 0 : i32
    return %c0_i32, %c0_i32_0 : i32, i32
  }
  func.func @transform_2(%arg0: i32) -> (i32, i32) {
    %c0_i32 = arith.constant 0 : i32
    %c0_i32_0 = arith.constant 0 : i32
    %c0_i32_1 = arith.constant 0 : i32
    return %c0_i32, %c0_i32_0 : i32, i32
  }
  func.func @transform_3(%arg0: i32) -> (i32, i32) {
    %c0_i32 = arith.constant 0 : i32
    %c0_i32_0 = arith.constant 0 : i32
    return %arg0, %c0_i32 : i32, i32
  }
}

</mosaic_0001>

<bundles_post_ra>
// kernel: tpu_custom_call.1
= control target key start
LH: loop header
LB: loop body
LE: loop exit
PB: predicated region body
PF: predicated region fallthrough
CT: control target
= control target key end

     0   :  { %s335_s0 = inlined_call_operand.vmem [shape: f32[64,32], index: 0, kind: input, shape index: {}]   ;;  %s336_s1 = inlined_call_operand.vmem [shape: f32[32,128], index: 1, kind: input, shape index: {}]   ;;  %s337_s2 = inlined_call_operand.vmem [shape: f32[1,128], index: 2, kind: input, shape index: {}]   ;;  %s338_s3 = inlined_call_operand.hbm [shape: f32[64,128], index: 3, kind: output, shape index: {}]  }
   0x1   :  { %v26_v0 = vld [vmem:[%s336_s1 + $0x18] sm:$0xff]  ;;  %v25_v1 = vld [vmem:[%s336_s1 + $0x10] sm:$0xff]  ;;  %v24_v2 = vld [vmem:[%s336_s1 + $0x8] sm:$0xff] }
   0x2   :  { %209 = vmatprep.subr.mxu0 %v26_v0  ;;  %229 = vmatprep.subr.mxu1 %v26_v0  ;;  %v23_v3 = vld [vmem:[%s336_s1] sm:$0xff] }
   0x3   :  { %210 = vmatpush3.msra.mxu0 %v26_v0  ;;  %233 = vmatpush3.msra.mxu1 %v26_v0 }
   0x4   :  { %211 = vmatprep.subr.mxu0 %v25_v1  ;;  %230 = vmatprep.subr.mxu1 %v25_v1 }
   0x5   :  { %212 = vmatpush3.msra.mxu0 %v25_v1  ;;  %234 = vmatpush3.msra.mxu1 %v25_v1 }
   0x6   :  { %8 = vsyncpa [#allocation3], 0  ;;  %213 = vmatprep.subr.mxu0 %v24_v2  ;;  %231 = vmatprep.subr.mxu1 %v24_v2  ;;  %v15_v4 = vld [vmem:[%s335_s0] sm:$0xff]  ;;  %vm34_vm0 = vcmask 261120   ;;  %v16_v6 = vld [vmem:[%s335_s0 + $0x8] sm:$0xff]  ;;  %s262_s10 = smov [#allocation2]  }
   0x7   :  { %214 = vmatpush3.msra.mxu0 %v24_v2  ;;  %235 = vmatpush3.msra.mxu1 %v24_v2  ;;  %v19_v5 = vld [vmem:[%s335_s0 + $0x20] sm:$0xff]  ;;  %v20_v7 = vld [vmem:[%s335_s0 + $0x28] sm:$0xff]  ;;  %v17_v8 = vld [vmem:[%s335_s0 + $0x10] sm:$0xff] }
   0x8   :  { %215 = vmatprep.subr.mxu0 %v23_v3  ;;  %232 = vmatprep.subr.mxu1 %v23_v3  ;;  %v21_v9 = vld [vmem:[%s335_s0 + $0x30] sm:$0xff]  ;;  %v18_v10 = vld [vmem:[%s335_s0 + $0x18] sm:$0xff]  ;;  %v188_v12 = vld [vmem:[%s337_s2] ss:$0 sm:$0xff] }
   0x9   :  { %216 = vmatpush3.msra.mxu0 %v23_v3  ;;  %236 = vmatpush3.msra.mxu1 %v23_v3  ;;  %v22_v11 = vld [vmem:[%s335_s0 + $0x38] sm:$0xff]  ;;  %s177_s0 = sshll.u32 %s262_s10, 4  ;;  %s178_s0 = int_to_ptr.vmem [resolvable:$true] %s177_s0 }
   0xa   :  { %217 = vmatprep.mubr.msk.f32.mxu0 %vm34_vm0, %v15_v4  ;;  %223 = vmatprep.mubr.msk.f32.mxu1 %vm34_vm0, %v19_v5  ;;  %s240_s2 = scalar_lea.vmem %s178_s0, 1024  ;;  %p245_p1 = scmp.lt.s32.totalorder %s178_s0, %s178_s0 }
   0xb   :  { %218 = vmatmul.mubr.msk.f32.vlgmr.msra.gmra.mxu0 %vm34_vm0, %v16_v6  ;;  %224 = vmatmul.mubr.msk.f32.vlgmr.msra.gmra.mxu1 %vm34_vm0, %v20_v7  ;;  %p241_p0 = scmp.ne.s32.totalorder %s178_s0, %s240_s2  ;;  %p246_p2 = scmp.lt.s32.totalorder %s240_s2, %s240_s2 }
   0xc   :  { %220 = vmatprep.mubr.msk.f32.mxu0 %vm34_vm0, %v17_v8  ;;  %226 = vmatprep.mubr.msk.f32.mxu1 %vm34_vm0, %v21_v9 }
   0xd   :  { %p247_p3 = por %p246_p2, %p245_p1 }
   0xf   :  { %221 = vmatmul.mubr.msk.f32.gmra.mxu0 %vm34_vm0, %v18_v10  ;;  %227 = vmatmul.mubr.msk.f32.gmra.mxu1 %vm34_vm0, %v22_v11  ;;  %p248_p4 = pnand %p247_p3, %p241_p0 }
  0xcb   :  { %v219_v13 = vpop.f32.mrf.mxu0  ;;  %v225_v14 = vpop.f32.mrf.mxu1 }
  0xcc   :  { %v131_v15 = vadd.f32 %v219_v13, %v188_v12  ;;  %v151_v16 = vadd.f32 %v225_v14, %v188_v12 }
  0xcd   :  { %v125_v17 = vpop.f32.mrf.mxu0  ;;  %v145_v18 = vpop.f32.mrf.mxu1 }
  0xce   :  { %165 = vst [vmem:[#allocation2 + $0x8] sm:$0xff] %v131_v15  ;;  %169 = vst [vmem:[#allocation2 + $0x28] sm:$0xff] %v151_v16  ;;  %v126_v19 = vadd.f32 %v188_v12, %v125_v17  ;;  %v146_v20 = vadd.f32 %v188_v12, %v145_v18 }
  0xcf   :  { %v222_v21 = vpop.f32.mrf.mxu0  ;;  %v228_v22 = vpop.f32.mrf.mxu1 }
  0xd0   :  { %164 = vst [vmem:[#allocation2] sm:$0xff] %v126_v19  ;;  %168 = vst [vmem:[#allocation2 + $0x20] sm:$0xff] %v146_v20  ;;  %v141_v23 = vadd.f32 %v222_v21, %v188_v12  ;;  %v161_v24 = vadd.f32 %v228_v22, %v188_v12 }
  0xd1   :  { %v135_v25 = vpop.f32.mrf.mxu0  ;;  %v155_v26 = vpop.f32.mrf.mxu1 }
  0xd2   :  { %167 = vst [vmem:[#allocation2 + $0x18] sm:$0xff] %v141_v23  ;;  %171 = vst [vmem:[#allocation2 + $0x38] sm:$0xff] %v161_v24  ;;  %v136_v27 = vadd.f32 %v188_v12, %v135_v25  ;;  %v156_v28 = vadd.f32 %v188_v12, %v155_v26 }
  0xd4   :  { %166 = vst [vmem:[#allocation2 + $0x10] sm:$0xff] %v136_v27  ;;  %170 = vst [vmem:[#allocation2 + $0x30] sm:$0xff] %v156_v28 }
  0xd5   :  { %251 = shalt.err (!%p248_p4)
}
  0xd6   :  { %s263_s11 = smov 128   ;;  %s264_s12 = smov 8  }
  0xd7   :  { %183 = dma.vmem_to_hbm [thread:$0]  %s178_s0, 1024, %s338_s3, [#allocation3], %s263_s11, %s263_s11, %s264_s12  }
  0xd8   :  { %260 = dma.done.wait [#allocation3], 1024  }
  0xd9   :  { %261 = vsyncadd [#allocation3], 4294966272 }
  0xda   :  { %187 = vsyncpa [#allocation3], 1 }

</bundles_post_ra>
